<compile_context>
chip_gen: v5e
topology: v5e:2x2
jax: 0.10.0
libtpu: 0.0.40
codegen_flags: <defaults>
</compile_context>

<pallas_src>
import functools

import jax
import jax.numpy as jnp
from jax.experimental import pallas as pl
from jax.experimental.pallas import tpu as pltpu

_LANE = 128
_VMEM_LIMIT = 32 * 1024 * 1024      # <= physical VMEM on v5e/v6e/v7x
_VMEM_BUDGET = 24 * 1024 * 1024     # target working-set for the pipeline
_TK_CAP = 8192                      # K-tile sweep ceiling (perf feedback)


def fused_vfsddpm_kernel(x_ref, we_ref, be_ref, loo_ref, wf_ref, bp_ref,
                         o_ref, acc_ref):
    """Encoder matmul (K-tiled, f32 acc) + leave-one-out matmul + SiLU + postpool."""
    k = pl.program_id(1)

    @pl.when(k == 0)
    def _init():
        acc_ref[...] = jnp.zeros_like(acc_ref)

    # Encoder projection: bf16 operands on the MXU, f32 accumulation across K tiles.
    acc_ref[...] += jnp.dot(x_ref[...], we_ref[...],
                            preferred_element_type=jnp.float32)

    @pl.when(k == pl.num_programs(1) - 1)
    def _epilogue():
        feat = acc_ref[...] + be_ref[...]                      # (rb, hp) f32

        # Leave-one-out mean for every i at once as a small MXU matmul
        # (stays 2D: no reshape, no axis-1 reduction, no broadcast subtract).
        hc = jnp.dot(loo_ref[...], feat,
                     preferred_element_type=jnp.float32)       # (rb, hp) f32

        # SiLU(x) = x * sigmoid(x); sigmoid via tanh (EUP slot, no inf for
        # large negative hc).  Kept f32: v5e VPU/EUP have no bf16.
        silu = hc * (0.5 * (jnp.tanh(0.5 * hc) + 1.0))

        # Memory == identity => cat(mc, hc) @ Wp folds into Wp[:h] + Wp[h:]
        # (pre-folded + bf16 in the wrapper).  Only MXU operands are bf16.
        c = jnp.dot(silu.astype(jnp.bfloat16), wf_ref[...],
                    preferred_element_type=jnp.float32) + bp_ref[...]
        o_ref[...] = c                                         # lane-dense store


def _round_up(x, m):
    return ((x + m - 1) // m) * m


def _pipeline_vmem_bytes(rb, tk, hp):
    """Rough double-buffered VMEM footprint for one grid step."""
    x_buf = 2 * rb * tk * 2                       # bf16 input tile
    we_buf = 2 * tk * hp * 2                      # bf16 encoder weight K tile
    wf_buf = 2 * hp * hp * 2                      # bf16 folded postpool weight
    loo_buf = 2 * max(rb, 8) * max(rb, _LANE) * 4
    bias_buf = 2 * 2 * 8 * hp * 4                 # be + bp (sublane padded)
    out_buf = 2 * rb * hp * 4
    acc = rb * hp * 4
    return x_buf + we_buf + wf_buf + loo_buf + bias_buf + out_buf + acc


def _choose_tk(d, rb, hp, budget=_VMEM_BUDGET, cap=_TK_CAP):
    """Largest lane-aligned K tile within the VMEM budget; prefer a divisor of d
    so x never needs an HBM-doubling jnp.pad copy."""
    def fits(t):
        return _pipeline_vmem_bytes(rb, t, hp) <= budget

    if d % _LANE == 0:
        t = min(d, cap)
        t -= t % _LANE
        while t >= _LANE:
            if d % t == 0 and fits(t):
                return t, d                        # exact tiling, no pad of x
            t -= _LANE
    # Fallback: pad the feature axis to a multiple of tk (zero pad is exact).
    t = min(cap, _round_up(d, _LANE))
    while t > _LANE and not fits(t):
        t -= _LANE
    return t, _round_up(d, t)


@functools.partial(jax.jit, static_argnames=("mode_conditioning",))
def vfsddpm_forward(batch, we_t, be, wp_t, bp, mode_conditioning="film"):
    """batch: (bs, ns, ch, h, w) float32.  Returns conditioning c per leave-one-out subset."""
    bs, ns, ch, h, w = batch.shape
    assert ns >= 2, "leave-one-out aggregation requires sample_size >= 2"
    d = ch * h * w
    hdim = we_t.shape[1]
    hp = _round_up(hdim, _LANE)      # lane-dense output + MXU N utilization

    # Row tiling: one batch per block when ns is sublane-aligned (gives a
    # "parallel" grid axis -> both v7x TensorCores; also bounds VMEM for big bs*ns).
    loo_b = (jnp.ones((ns, ns), jnp.float32)
             - jnp.eye(ns, dtype=jnp.float32)) * (1.0 / (ns - 1))
    if ns % 8 == 0:
        rb, nb = ns, bs
        loo = loo_b
    else:
        rb, nb = bs * ns, 1
        loo = jnp.kron(jnp.eye(bs, dtype=jnp.float32), loo_b)

    tk, d_pad = _choose_tk(d, rb, hp)
    kt = d_pad // tk

    # bf16 MXU operands; accumulation stays f32 in-kernel.
    x_flat = batch.reshape(bs * ns, d).astype(jnp.bfloat16)
    we = we_t.astype(jnp.bfloat16)
    if d_pad != d:
        # TODO(synk): only hit when no lane-aligned divisor of d fits the budget.
        x_flat = jnp.pad(x_flat, ((0, 0), (0, d_pad - d)))
        we = jnp.pad(we, ((0, d_pad - d), (0, 0)))
    if hp != hdim:
        we = jnp.pad(we, ((0, 0), (0, hp - hdim)))

    be_p = jnp.pad(be.astype(jnp.float32), ((0, 0), (0, hp - hdim)))
    bp_p = jnp.pad(bp.astype(jnp.float32), ((0, 0), (0, hp - hdim)))

    # Memory == identity placeholder => fold the two halves of the postpool weight.
    wfold = (wp_t[:hdim] + wp_t[hdim:]).astype(jnp.bfloat16)
    wfold = jnp.pad(wfold, ((0, hp - hdim), (0, hp - hdim)))

    out2d = pl.pallas_call(
        fused_vfsddpm_kernel,
        out_shape=jax.ShapeDtypeStruct((bs * ns, hp), jnp.float32),
        grid=(nb, kt),                                    # rows parallel, K reduction last
        in_specs=[
            pl.BlockSpec((rb, tk), lambda b, k: (b, k)),  # x tile
            pl.BlockSpec((tk, hp), lambda b, k: (k, 0)),  # encoder weight K tile
            pl.BlockSpec((1, hp), lambda b, k: (0, 0)),   # encoder bias (invariant)
            pl.BlockSpec((rb, rb), lambda b, k: (0, 0)),  # leave-one-out matrix
            pl.BlockSpec((hp, hp), lambda b, k: (0, 0)),  # folded postpool weight (bf16)
            pl.BlockSpec((1, hp), lambda b, k: (0, 0)),   # postpool bias
        ],
        out_specs=pl.BlockSpec((rb, hp), lambda b, k: (b, 0)),
        scratch_shapes=[pltpu.VMEM((rb, hp), jnp.float32)],
        compiler_params=pltpu.CompilerParams(
            dimension_semantics=("parallel", "arbitrary"),
            vmem_limit_bytes=_VMEM_LIMIT),
    )(x_flat, we, be_p, loo, wfold, bp_p)

    c_set = out2d[:, :hdim].reshape(bs, ns, hdim)
    if mode_conditioning == "lag":
        c = c_set.reshape(-1, c_set.shape[-2], c_set.shape[-1])
    else:
        c = c_set.reshape(-1, c_set.shape[-1])                 # (bs*ns, hdim)
    return {"c": c, "c_set": c_set}


def _reference(batch, we_t, be, wp_t, bp):
    """Pure-JAX reference mirroring the module's per-i leave-one-out loop
    (same bf16 placement as the kernel: encoder + postpool matmul operands)."""
    bs, ns = batch.shape[:2]
    hdim = we_t.shape[1]
    x = batch.reshape(bs * ns, -1).astype(jnp.bfloat16)
    feat = jnp.dot(x, we_t.astype(jnp.bfloat16),
                   preferred_element_type=jnp.float32) + be
    feat = feat.reshape(bs, ns, hdim)
    outs = []
    for i in range(ns):
        mask = jnp.arange(ns) != i
        hc = feat[:, mask].mean(axis=1)                        # mean over the ns-1 kept images
        cat = jnp.concatenate([hc, hc], axis=-1)               # mc == hc (identity Memory)
        silu = cat * jax.nn.sigmoid(cat)
        outs.append(jnp.dot(silu.astype(jnp.bfloat16), wp_t.astype(jnp.bfloat16),
                            preferred_element_type=jnp.float32) + bp)
    return jnp.stack(outs, axis=1)


if __name__ == "__main__":
    # small shapes consistent with the module's forward
    bs, ns, ch, h, w = 2, 8, 4, 16, 16
    hdim = 32
    d = ch * h * w

    key = jax.random.PRNGKey(0)
    kb, ke, kp = jax.random.split(key, 3)

    batch = jax.random.normal(kb, (bs, ns, ch, h, w), dtype=jnp.float32)

    # deterministic synthetic parameters
    we_t = 0.02 * jax.random.normal(ke, (d, hdim), dtype=jnp.float32)         # encoder proj^T
    be = jnp.zeros((1, hdim), dtype=jnp.float32)
    wp_t = 0.02 * jax.random.normal(kp, (2 * hdim, hdim), dtype=jnp.float32)  # postpool Linear(2h,h)^T
    bp = jnp.zeros((1, hdim), dtype=jnp.float32)

    out = vfsddpm_forward(batch, we_t, be, wp_t, bp, mode_conditioning="film")
    c = jax.block_until_ready(out["c"])
    c_set = jax.block_until_ready(out["c_set"])

    ref = _reference(batch, we_t, be, wp_t, bp)
    assert c.shape == (bs * ns, hdim)
    assert c_set.shape == (bs, ns, hdim)
    err = float(jnp.max(jnp.abs(c_set - ref)))
    assert jnp.allclose(c_set, ref, rtol=1e-3, atol=2e-3), err

    print("KERNEL_OK")
</pallas_src>

<mosaic_0001>
module attributes {stable_mosaic.version = 11 : i64} {
  func.func @fused_vfsddpm_kernel(%arg0: i32, %arg1: i32, %arg2: memref<8x1024xbf16, #tpu.memory_space<vmem>>, %arg3: memref<1024x128xbf16, #tpu.memory_space<vmem>>, %arg4: memref<1x128xf32, #tpu.memory_space<vmem>>, %arg5: memref<8x8xf32, #tpu.memory_space<vmem>>, %arg6: memref<128x128xbf16, #tpu.memory_space<vmem>>, %arg7: memref<1x128xf32, #tpu.memory_space<vmem>>, %arg8: memref<8x128xf32, #tpu.memory_space<vmem>>, %arg9: memref<8x128xf32, #tpu.memory_space<vmem>>) attributes {dimension_semantics = [#tpu.dimension_semantics<parallel>, #tpu.dimension_semantics<arbitrary>], iteration_bounds = array<i64: 2, 1>, scalar_prefetch = 0 : i64, scratch_operands = 1 : i64, tpu.core_type = #tpu.core_type<tc>, window_params = [{transform_indices = @transform_0, window_bounds = array<i64: 8, 1024>}, {transform_indices = @transform_1, window_bounds = array<i64: 1024, 128>}, {pipeline_mode = #tpu.pipeline_mode<synchronous>, transform_indices = @transform_2, window_bounds = array<i64: 1, 128>}, {pipeline_mode = #tpu.pipeline_mode<synchronous>, transform_indices = @transform_3, window_bounds = array<i64: 8, 8>}, {pipeline_mode = #tpu.pipeline_mode<synchronous>, transform_indices = @transform_4, window_bounds = array<i64: 128, 128>}, {pipeline_mode = #tpu.pipeline_mode<synchronous>, transform_indices = @transform_5, window_bounds = array<i64: 1, 128>}, {transform_indices = @transform_6, window_bounds = array<i64: 8, 128>}]} {
    %c0_i32 = arith.constant 0 : i32
    %0 = arith.cmpi eq, %arg1, %c0_i32 : i32
    %1 = arith.extui %0 : i1 to i32
    %c0_i32_0 = arith.constant 0 : i32
    %2 = arith.cmpi ne, %1, %c0_i32_0 : i32
    scf.if %2 {
      %cst_10 = arith.constant 0.000000e+00 : f32
      %12 = vector.broadcast %cst_10 : f32 to vector<8x128xf32>
      %c0_11 = arith.constant 0 : index
      %c0_12 = arith.constant 0 : index
      %13 = vector.load %arg9[%c0_11, %c0_12] : memref<8x128xf32, #tpu.memory_space<vmem>>, vector<8x128xf32>
      tpu.vector_store %arg9[%c0_11, %c0_12], %12 {strides = array<i32>} : memref<8x128xf32, #tpu.memory_space<vmem>>, vector<8x128xf32>,
    } else {
    }
    %c0 = arith.constant 0 : index
    %c0_1 = arith.constant 0 : index
    %3 = vector.load %arg9[%c0, %c0_1] : memref<8x128xf32, #tpu.memory_space<vmem>>, vector<8x128xf32>
    %c0_2 = arith.constant 0 : index
    %c0_3 = arith.constant 0 : index
    %4 = vector.load %arg2[%c0_2, %c0_3] : memref<8x1024xbf16, #tpu.memory_space<vmem>>, vector<8x1024xbf16>
    %c0_4 = arith.constant 0 : index
    %c0_5 = arith.constant 0 : index
    %5 = vector.load %arg3[%c0_4, %c0_5] : memref<1024x128xbf16, #tpu.memory_space<vmem>>, vector<1024x128xbf16>
    %cst = arith.constant dense<0.000000e+00> : vector<8x128xf32>
    %6 = tpu.matmul %4, %5, %cst {dimension_numbers = #tpu.dot_dimension_numbers<[1], [0], [0], [1], [0, 0, 1, 1], [], []>} : vector<8x1024xbf16>, vector<1024x128xbf16>, vector<8x128xf32> -> vector<8x128xf32>
    %7 = arith.addf %3, %6 : vector<8x128xf32>
    %c0_6 = arith.constant 0 : index
    %c0_7 = arith.constant 0 : index
    %8 = vector.load %arg9[%c0_6, %c0_7] : memref<8x128xf32, #tpu.memory_space<vmem>>, vector<8x128xf32>
    tpu.vector_store %arg9[%c0_6, %c0_7], %7 {strides = array<i32>} : memref<8x128xf32, #tpu.memory_space<vmem>>, vector<8x128xf32>,
    %c0_i32_8 = arith.constant 0 : i32
    %9 = arith.cmpi eq, %arg1, %c0_i32_8 : i32
    %10 = arith.extui %9 : i1 to i32
    %c0_i32_9 = arith.constant 0 : i32
    %11 = arith.cmpi ne, %10, %c0_i32_9 : i32
    scf.if %11 {
      %c0_10 = arith.constant 0 : index
      %c0_11 = arith.constant 0 : index
      %12 = vector.load %arg9[%c0_10, %c0_11] : memref<8x128xf32, #tpu.memory_space<vmem>>, vector<8x128xf32>
      %c0_12 = arith.constant 0 : index
      %c0_13 = arith.constant 0 : index
      %13 = vector.load %arg4[%c0_12, %c0_13] : memref<1x128xf32, #tpu.memory_space<vmem>>, vector<1x128xf32>
      %14 = vector.broadcast %13 : vector<1x128xf32> to vector<8x128xf32>
      %15 = arith.addf %12, %14 : vector<8x128xf32>
      %c0_14 = arith.constant 0 : index
      %c0_15 = arith.constant 0 : index
      %16 = vector.load %arg5[%c0_14, %c0_15] : memref<8x8xf32, #tpu.memory_space<vmem>>, vector<8x8xf32>
      %cst_16 = arith.constant dense<0.000000e+00> : vector<8x128xf32>
      %17 = tpu.matmul %16, %15, %cst_16 {dimension_numbers = #tpu.dot_dimension_numbers<[1], [0], [0], [1], [0, 0, 1, 1], [], []>} : vector<8x8xf32>, vector<8x128xf32>, vector<8x128xf32> -> vector<8x128xf32>
      %cst_17 = arith.constant 5.000000e-01 : f32
      %18 = vector.broadcast %cst_17 : f32 to vector<8x128xf32>
      %19 = arith.mulf %18, %17 : vector<8x128xf32>
      %20 = math.tanh %19 : vector<8x128xf32>
      %cst_18 = arith.constant 1.000000e+00 : f32
      %21 = vector.broadcast %cst_18 : f32 to vector<8x128xf32>
      %22 = arith.addf %20, %21 : vector<8x128xf32>
      %cst_19 = arith.constant 5.000000e-01 : f32
      %23 = vector.broadcast %cst_19 : f32 to vector<8x128xf32>
      %24 = arith.mulf %23, %22 : vector<8x128xf32>
      %25 = arith.mulf %17, %24 : vector<8x128xf32>
      %26 = arith.truncf %25 : vector<8x128xf32> to vector<8x128xbf16>
      %c0_20 = arith.constant 0 : index
      %c0_21 = arith.constant 0 : index
      %27 = vector.load %arg6[%c0_20, %c0_21] : memref<128x128xbf16, #tpu.memory_space<vmem>>, vector<128x128xbf16>
      %cst_22 = arith.constant dense<0.000000e+00> : vector<8x128xf32>
      %28 = tpu.matmul %26, %27, %cst_22 {dimension_numbers = #tpu.dot_dimension_numbers<[1], [0], [0], [1], [0, 0, 1, 1], [], []>} : vector<8x128xbf16>, vector<128x128xbf16>, vector<8x128xf32> -> vector<8x128xf32>
      %c0_23 = arith.constant 0 : index
      %c0_24 = arith.constant 0 : index
      %29 = vector.load %arg7[%c0_23, %c0_24] : memref<1x128xf32, #tpu.memory_space<vmem>>, vector<1x128xf32>
      %30 = vector.broadcast %29 : vector<1x128xf32> to vector<8x128xf32>
      %31 = arith.addf %28, %30 : vector<8x128xf32>
      %c0_25 = arith.constant 0 : index
      %c0_26 = arith.constant 0 : index
      %32 = vector.load %arg8[%c0_25, %c0_26] : memref<8x128xf32, #tpu.memory_space<vmem>>, vector<8x128xf32>
      tpu.vector_store %arg8[%c0_25, %c0_26], %31 {strides = array<i32>} : memref<8x128xf32, #tpu.memory_space<vmem>>, vector<8x128xf32>,
    } else {
    }
    return
  }
  func.func @transform_0(%arg0: i32, %arg1: i32) -> (i32, i32) {
    %c0_i32 = arith.constant 0 : i32
    return %arg0, %arg1 : i32, i32
  }
  func.func @transform_1(%arg0: i32, %arg1: i32) -> (i32, i32) {
    %c0_i32 = arith.constant 0 : i32
    %c0_i32_0 = arith.constant 0 : i32
    return %arg1, %c0_i32 : i32, i32
  }
  func.func @transform_2(%arg0: i32, %arg1: i32) -> (i32, i32) {
    %c0_i32 = arith.constant 0 : i32
    %c0_i32_0 = arith.constant 0 : i32
    %c0_i32_1 = arith.constant 0 : i32
    return %c0_i32, %c0_i32_0 : i32, i32
  }
  func.func @transform_3(%arg0: i32, %arg1: i32) -> (i32, i32) {
    %c0_i32 = arith.constant 0 : i32
    %c0_i32_0 = arith.constant 0 : i32
    %c0_i32_1 = arith.constant 0 : i32
    return %c0_i32, %c0_i32_0 : i32, i32
  }
  func.func @transform_4(%arg0: i32, %arg1: i32) -> (i32, i32) {
    %c0_i32 = arith.constant 0 : i32
    %c0_i32_0 = arith.constant 0 : i32
    %c0_i32_1 = arith.constant 0 : i32
    return %c0_i32, %c0_i32_0 : i32, i32
  }
  func.func @transform_5(%arg0: i32, %arg1: i32) -> (i32, i32) {
    %c0_i32 = arith.constant 0 : i32
    %c0_i32_0 = arith.constant 0 : i32
    %c0_i32_1 = arith.constant 0 : i32
    return %c0_i32, %c0_i32_0 : i32, i32
  }
  func.func @transform_6(%arg0: i32, %arg1: i32) -> (i32, i32) {
    %c0_i32 = arith.constant 0 : i32
    %c0_i32_0 = arith.constant 0 : i32
    return %arg0, %c0_i32 : i32, i32
  }
}

</mosaic_0001>

<bundles_post_ra>
// kernel: vfsddpm_forward.1
= control target key start
LH: loop header
LB: loop body
LE: loop exit
PB: predicated region body
PF: predicated region fallthrough
CT: control target
= control target key end

     0   :  { %s1621_s21 = smov 0   ;;  %s1623_s22 = smov 0   ;;  %s1893_s0 = inlined_call_operand.vmem [shape: bf16[16,1024], index: 0, kind: input, shape index: {}]   ;;  %s1894_s1 = inlined_call_operand.vmem [shape: bf16[1024,128], index: 1, kind: input, shape index: {}]   ;;  %s1895_s2 = inlined_call_operand.vmem [shape: f32[1,128], index: 2, kind: input, shape index: {}]   ;;  %s1896_s3 = inlined_call_operand.vmem [shape: f32[8,8], index: 3, kind: input, shape index: {}]   ;;  %s1897_s4 = inlined_call_operand.vmem [shape: bf16[128,128], index: 4, kind: input, shape index: {}]   ;;  %s1898_s5 = inlined_call_operand.vmem [shape: f32[1,128], index: 5, kind: input, shape index: {}]   ;;  %s1899_s6 = inlined_call_operand.vmem [shape: f32[16,128], index: 6, kind: output, shape index: {}]  }
   0x1   :  { %s1625_s23 = smov 0  }
   0x2 LB: > { %s28_s24 = sadd.s32 1, %s1580_s22  ;;  %p1166_p0 = scmp.ge.s32.totalorder %s1584_s23, 1  ;;  %s1584_s23 = sphi %s1625_s23, %s16_s23   ;;  %s1580_s22 = sphi %s1623_s22, %s1901_s22   ;;  %s1576_s21 = sphi %s1621_s21, %s1900_s21  }
   0x3   : > { %p30_p1 = scmp.ge.s32.totalorder %s28_s24, 2  ;;  %p242_p2 = scmp.lt.s32.totalorder %s1584_s23, 3 }
   0x5   : > { %s1903_s24 = smov (%p30_p1, %s28_s24), 0  ;;  %p243_p3 = pnand %p1166_p0, %p242_p2 }
   0x6   : > { %p281_p4 = scmp.lt.s32.totalorder (!%p243_p3), %s1576_s21, 1 }
   0x7   : > { %246 = sbr.rel (%p243_p3) target bundleno = 494 (0x1ee), region = 44 }
   0xc   : > { %v1469_v0 = vld [vmem:[%s1894_s1 + $0x38] sm:$0xff]  ;;  %v1468_v4 = vld [vmem:[%s1894_s1 + $0x30] sm:$0xff]  ;;  %v1467_v8 = vld [vmem:[%s1894_s1 + $0x28] sm:$0xff]  ;;  %s1905_s21 = smov (!%p281_p4, %s1576_s21), 1  ;;  %vm966_vm0 = vcmask 64512  }
   0xd   : > { %v1477_v1 = vld [vmem:[%s1894_s1 + $0x78] sm:$0xff]  ;;  %850 = vmatpush.bf16.msra.mxu0 %v1469_v0  ;;  %v1476_v5 = vld [vmem:[%s1894_s1 + $0x70] sm:$0xff]  ;;  %v1475_v9 = vld [vmem:[%s1894_s1 + $0x68] sm:$0xff]  ;;  %s1461_s27 = sshll.u32 %s1905_s21, 5  ;;  %s1169_s16 = sshll.u32 %s1905_s21, 3 }
   0xe   : > { %v1485_v2 = vld [vmem:[%s1894_s1 + $0xb8] sm:$0xff]  ;;  %863 = vmatpush.bf16.msra.mxu1 %v1477_v1  ;;  %v1484_v6 = vld [vmem:[%s1894_s1 + $0xb0] sm:$0xff]  ;;  %v1483_v10 = vld [vmem:[%s1894_s1 + $0xa8] sm:$0xff]  ;;  %s1721_s12 = scalar_lea.vmem %s1893_s0, %s1461_s27  ;;  %s299_s25 = scalar_lea.vmem %s1899_s6, %s1169_s16 }
   0xf   : > { %v1493_v3 = vld [vmem:[%s1894_s1 + $0xf8] sm:$0xff]  ;;  %876 = vmatpush.bf16.msra.mxu2 %v1485_v2  ;;  %v1492_v7 = vld [vmem:[%s1894_s1 + $0xf0] sm:$0xff]  ;;  %v1491_v11 = vld [vmem:[%s1894_s1 + $0xe8] sm:$0xff] }
  0x10   : > { %889 = vmatpush.bf16.msra.mxu3 %v1493_v3  ;;  %v1466_v12 = vld [vmem:[%s1894_s1 + $0x20] sm:$0xff]  ;;  %v1465_v16 = vld [vmem:[%s1894_s1 + $0x18] sm:$0xff]  ;;  %v1464_v20 = vld [vmem:[%s1894_s1 + $0x10] sm:$0xff] }
  0x11   : > { %851 = vmatpush.bf16.msra.mxu0 %v1468_v4  ;;  %v1474_v13 = vld [vmem:[%s1894_s1 + $0x60] sm:$0xff]  ;;  %v1473_v17 = vld [vmem:[%s1894_s1 + $0x58] sm:$0xff]  ;;  %v1472_v21 = vld [vmem:[%s1894_s1 + $0x50] sm:$0xff] }
  0x12   : > { %864 = vmatpush.bf16.msra.mxu1 %v1476_v5  ;;  %v1482_v14 = vld [vmem:[%s1894_s1 + $0xa0] sm:$0xff]  ;;  %v1481_v18 = vld [vmem:[%s1894_s1 + $0x98] sm:$0xff]  ;;  %v1480_v22 = vld [vmem:[%s1894_s1 + $0x90] sm:$0xff] }
  0x13   : > { %877 = vmatpush.bf16.msra.mxu2 %v1484_v6  ;;  %v1490_v15 = vld [vmem:[%s1894_s1 + $0xe0] sm:$0xff]  ;;  %v1489_v19 = vld [vmem:[%s1894_s1 + $0xd8] sm:$0xff]  ;;  %v1488_v23 = vld [vmem:[%s1894_s1 + $0xd0] sm:$0xff] }
  0x14   : > { %890 = vmatpush.bf16.msra.mxu3 %v1492_v7  ;;  %v1463_v24 = vld [vmem:[%s1894_s1 + $0x8] sm:$0xff]  ;;  %v306_v29 = vld [vmem:[%s1721_s12] sm:$0xff]  ;;  %v1501_v38 = vld [vmem:[%s1894_s1 + $0x138] sm:$0xff] }
  0x15   : > { %852 = vmatpush.bf16.msra.mxu0 %v1467_v8  ;;  %v1471_v25 = vld [vmem:[%s1894_s1 + $0x48] sm:$0xff]  ;;  %v1462_v30 = vld [vmem:[%s1894_s1] sm:$0xff]  ;;  %v442_v33 = vunpack.c.l.b16 %v306_v29  ;;  %v443_v37 = vunpack.c.h.b16 %v306_v29  ;;  %v1509_v39 = vld [vmem:[%s1894_s1 + $0x178] sm:$0xff] }
  0x16   : > { %865 = vmatpush.bf16.msra.mxu1 %v1475_v9  ;;  %v1479_v26 = vld [vmem:[%s1894_s1 + $0x88] sm:$0xff]  ;;  %v1470_v31 = vld [vmem:[%s1894_s1 + $0x40] sm:$0xff]  ;;  %v1517_v40 = vld [vmem:[%s1894_s1 + $0x1b8] sm:$0xff] }
  0x17   : > { %878 = vmatpush.bf16.msra.mxu2 %v1483_v10  ;;  %v1487_v27 = vld [vmem:[%s1894_s1 + $0xc8] sm:$0xff]  ;;  %v1478_v34 = vld [vmem:[%s1894_s1 + $0x80] sm:$0xff]  ;;  %v1525_v41 = vld [vmem:[%s1894_s1 + $0x1f8] sm:$0xff]  ;;  %v450_v43 = vpack.c.b16 %v442_v33, %v442_v33  ;;  %v451_v45 = vpack.c.b16 %v443_v37, %v443_v37 }
  0x18   : > { %891 = vmatpush.bf16.msra.mxu3 %v1491_v11  ;;  %v307_v28 = vld [vmem:[%s1721_s12 + $0x8] sm:$0xff]  ;;  %v1486_v35 = vld [vmem:[%s1894_s1 + $0xc0] sm:$0xff]  ;;  %v1500_v46 = vld [vmem:[%s1894_s1 + $0x130] sm:$0xff] }
  0x19   : > { %853 = vmatpush.bf16.msra.mxu0 %v1466_v12  ;;  %v444_v32 = vunpack.c.l.b16 %v307_v28  ;;  %v445_v36 = vunpack.c.h.b16 %v307_v28  ;;  %v1508_v47 = vld [vmem:[%s1894_s1 + $0x170] sm:$0xff]  ;;  %v1499_v50 = vld [vmem:[%s1894_s1 + $0x128] sm:$0xff]  ;;  %v1498_v54 = vld [vmem:[%s1894_s1 + $0x120] sm:$0xff] }
  0x1a   : > { %866 = vmatpush.bf16.msra.mxu1 %v1474_v13  ;;  %v1516_v48 = vld [vmem:[%s1894_s1 + $0x1b0] sm:$0xff]  ;;  %v1507_v51 = vld [vmem:[%s1894_s1 + $0x168] sm:$0xff]  ;;  %v1506_v55 = vld [vmem:[%s1894_s1 + $0x160] sm:$0xff] }
  0x1b   : > { %879 = vmatpush.bf16.msra.mxu2 %v1482_v14  ;;  %v452_v42 = vpack.c.b16 %v444_v32, %v444_v32  ;;  %v453_v44 = vpack.c.b16 %v445_v36, %v445_v36  ;;  %v1524_v49 = vld [vmem:[%s1894_s1 + $0x1f0] sm:$0xff]  ;;  %v1515_v52 = vld [vmem:[%s1894_s1 + $0x1a8] sm:$0xff]  ;;  %v1514_v56 = vld [vmem:[%s1894_s1 + $0x1a0] sm:$0xff] }
  0x1c   : > { %892 = vmatpush.bf16.msra.mxu3 %v1490_v15  ;;  %v1523_v53 = vld [vmem:[%s1894_s1 + $0x1e8] sm:$0xff]  ;;  %v1522_v57 = vld [vmem:[%s1894_s1 + $0x1e0] sm:$0xff]  ;;  %v1497_v58 = vld [vmem:[%s1894_s1 + $0x118] sm:$0xff] }
  0x1d   : > { %854 = vmatpush.bf16.msra.mxu0 %v1465_v16  ;;  %v1505_v59 = vld [vmem:[%s1894_s1 + $0x158] sm:$0xff]  ;;  %v1496_v62 = vld [vmem:[%s1894_s1 + $0x110] sm:$0xff]  ;;  %v1495_v2 = vld [vmem:[%s1894_s1 + $0x108] sm:$0xff] }
  0x1e   : > { %867 = vmatpush.bf16.msra.mxu1 %v1473_v17  ;;  %v1513_v60 = vld [vmem:[%s1894_s1 + $0x198] sm:$0xff]  ;;  %v1504_v63 = vld [vmem:[%s1894_s1 + $0x150] sm:$0xff]  ;;  %v1503_v3 = vld [vmem:[%s1894_s1 + $0x148] sm:$0xff] }
  0x1f   : > { %880 = vmatpush.bf16.msra.mxu2 %v1481_v18  ;;  %v1521_v61 = vld [vmem:[%s1894_s1 + $0x1d8] sm:$0xff]  ;;  %v1512_v0 = vld [vmem:[%s1894_s1 + $0x190] sm:$0xff]  ;;  %v1511_v5 = vld [vmem:[%s1894_s1 + $0x188] sm:$0xff] }
  0x20   : > { %893 = vmatpush.bf16.msra.mxu3 %v1489_v19  ;;  %v1520_v1 = vld [vmem:[%s1894_s1 + $0x1d0] sm:$0xff]  ;;  %v1519_v6 = vld [vmem:[%s1894_s1 + $0x1c8] sm:$0xff]  ;;  %v309_v7 = vld [vmem:[%s1721_s12 + $0x18] sm:$0xff] }
  0x21   : > { %855 = vmatpush.bf16.msra.mxu0 %v1464_v20  ;;  %v308_v4 = vld [vmem:[%s1721_s12 + $0x10] sm:$0xff]  ;;  %v1494_v10 = vld [vmem:[%s1894_s1 + $0x100] sm:$0xff]  ;;  %v448_v12 = vunpack.c.l.b16 %v309_v7  ;;  %v449_v13 = vunpack.c.h.b16 %v309_v7 }
  0x22   : > { %868 = vmatpush.bf16.msra.mxu1 %v1472_v21  ;;  %v446_v8 = vunpack.c.l.b16 %v308_v4  ;;  %v447_v9 = vunpack.c.h.b16 %v308_v4  ;;  %v1502_v11 = vld [vmem:[%s1894_s1 + $0x140] sm:$0xff]  ;;  %v1532_v28 = vld [vmem:[%s1897_s4 + $0x30] sm:$0xff] }
  0x23   : > { %881 = vmatpush.bf16.msra.mxu2 %v1480_v22  ;;  %v1510_v14 = vld [vmem:[%s1894_s1 + $0x180] sm:$0xff]  ;;  %v456_v18 = vpack.c.b16 %v448_v12, %v448_v12  ;;  %v457_v19 = vpack.c.b16 %v449_v13, %v449_v13 }
  0x24   : > { %894 = vmatpush.bf16.msra.mxu3 %v1488_v23  ;;  %v1518_v15 = vld [vmem:[%s1894_s1 + $0x1c0] sm:$0xff]  ;;  %v454_v16 = vpack.c.b16 %v446_v8, %v446_v8  ;;  %v455_v17 = vpack.c.b16 %v447_v9, %v447_v9 }
  0x25   : > { %856 = vmatpush.bf16.msra.mxu0 %v1463_v24  ;;  %v1530_v32 = vld [vmem:[%s1897_s4 + $0x20] sm:$0xff] }
  0x26   : > { %869 = vmatpush.bf16.msra.mxu1 %v1471_v25 }
  0x27   : > { %882 = vmatpush.bf16.msra.mxu2 %v1479_v26  ;;  %v1533_v26 = vld [vmem:[%s1897_s4 + $0x38] sm:$0xff] }
  0x28   : > { %895 = vmatpush.bf16.msra.mxu3 %v1487_v27 }
  0x29   : > { %857 = vmatpush.bf16.msra.mxu0 %v1462_v30  ;;  %v1531_v30 = vld [vmem:[%s1897_s4 + $0x28] sm:$0xff] }
  0x2a   : > { %870 = vmatpush.bf16.msra.mxu1 %v1470_v31 }
  0x2b   : > { %883 = vmatpush.bf16.msra.mxu2 %v1478_v34 }
  0x2c   : > { %896 = vmatpush.bf16.msra.mxu3 %v1486_v35  ;;  %858 = vmatmul.bf16.vlgmr.msra.gmra.mxu0 %v450_v43 }
  0x2d   : > { %902 = vmatpush.bf16.msrb.mxu0 %v1501_v38  ;;  %871 = vmatmul.bf16.vlgmr.msra.gmra.mxu1 %v451_v45 }
  0x2e   : > { %915 = vmatpush.bf16.msrb.mxu1 %v1509_v39  ;;  %884 = vmatmul.bf16.vlgmr.msra.gmra.mxu2 %v452_v42  ;;  %v1558_v42 = vld [vmem:[%s1895_s2] ss:$0 sm:$0xff] }
  0x2f   : > { %928 = vmatpush.bf16.msrb.mxu2 %v1517_v40  ;;  %897 = vmatmul.bf16.vlgmr.msra.gmra.mxu3 %v453_v44 }
  0x30   : > { %941 = vmatpush.bf16.msrb.mxu3 %v1525_v41 }
  0x31   : > { %903 = vmatpush.bf16.msrb.mxu0 %v1500_v46 }
  0x32   : > { %916 = vmatpush.bf16.msrb.mxu1 %v1508_v47  ;;  %v965_v47 = vld [vmem:[%s1896_s3] sm:$0xff] }
  0x33   : > { %929 = vmatpush.bf16.msrb.mxu2 %v1516_v48 }
  0x34   : > { %942 = vmatpush.bf16.msrb.mxu3 %v1524_v49 }
  0x35   : > { %904 = vmatpush.bf16.msrb.mxu0 %v1499_v50  ;;  %v1529_v50 = vld [vmem:[%s1897_s4 + $0x18] sm:$0xff] }
  0x36   : > { %917 = vmatpush.bf16.msrb.mxu1 %v1507_v51  ;;  %v1528_v51 = vld [vmem:[%s1897_s4 + $0x10] sm:$0xff] }
  0x37   : > { %930 = vmatpush.bf16.msrb.mxu2 %v1515_v52  ;;  %v1527_v52 = vld [vmem:[%s1897_s4 + $0x8] sm:$0xff] }
  0x38   : > { %943 = vmatpush.bf16.msrb.mxu3 %v1523_v53  ;;  %v1526_v53 = vld [vmem:[%s1897_s4] sm:$0xff] }
  0x39   : > { %905 = vmatpush.bf16.msrb.mxu0 %v1498_v54 }
  0x3a   : > { %918 = vmatpush.bf16.msrb.mxu1 %v1506_v55 }
  0x3b   : > { %931 = vmatpush.bf16.msrb.mxu2 %v1514_v56 }
  0x3c   : > { %944 = vmatpush.bf16.msrb.mxu3 %v1522_v57 }
  0x3d   : > { %906 = vmatpush.bf16.msrb.mxu0 %v1497_v58 }
  0x3e   : > { %919 = vmatpush.bf16.msrb.mxu1 %v1505_v59 }
  0x3f   : > { %932 = vmatpush.bf16.msrb.mxu2 %v1513_v60 }
  0x40   : > { %945 = vmatpush.bf16.msrb.mxu3 %v1521_v61  ;;  %v1559_v61 = vld [vmem:[%s1898_s5] ss:$0 sm:$0xff] }
  0x41   : > { %907 = vmatpush.bf16.msrb.mxu0 %v1496_v62 }
  0x42   : > { %920 = vmatpush.bf16.msrb.mxu1 %v1504_v63 }
  0x43   : > { %933 = vmatpush.bf16.msrb.mxu2 %v1512_v0 }
  0x44   : > { %946 = vmatpush.bf16.msrb.mxu3 %v1520_v1 }
  0x45   : > { %908 = vmatpush.bf16.msrb.mxu0 %v1495_v2 }
  0x46   : > { %921 = vmatpush.bf16.msrb.mxu1 %v1503_v3 }
  0x47   : > { %934 = vmatpush.bf16.msrb.mxu2 %v1511_v5 }
  0x48   : > { %947 = vmatpush.bf16.msrb.mxu3 %v1519_v6 }
  0x49   : > { %909 = vmatpush.bf16.msrb.mxu0 %v1494_v10 }
  0x4a   : > { %922 = vmatpush.bf16.msrb.mxu1 %v1502_v11 }
  0x4b   : > { %935 = vmatpush.bf16.msrb.mxu2 %v1510_v14 }
  0x4c   : > { %948 = vmatpush.bf16.msrb.mxu3 %v1518_v15  ;;  %910 = vmatmul.bf16.vlgmr.msrb.gmra.mxu0 %v454_v16 }
  0x4d   : > { %923 = vmatmul.bf16.vlgmr.msrb.gmra.mxu1 %v455_v17 }
  0x4e   : > { %936 = vmatmul.bf16.vlgmr.msrb.gmra.mxu2 %v456_v18  ;;  %1064 = vmatpush.bf16.msra.mxu1 %v1533_v26 }
  0x4f   : > { %949 = vmatmul.bf16.vlgmr.msrb.gmra.mxu3 %v457_v19 }
  0x52   : > { %1065 = vmatpush.bf16.msra.mxu1 %v1532_v28 }
  0x56   : > { %1066 = vmatpush.bf16.msra.mxu1 %v1531_v30 }
  0x5a   : > { %1067 = vmatpush.bf16.msra.mxu1 %v1530_v32 }
  0x5e   : > { %1068 = vmatpush.bf16.msra.mxu1 %v1529_v50 }
  0x62   : > { %1069 = vmatpush.bf16.msra.mxu1 %v1528_v51 }
  0x66   : > { %1070 = vmatpush.bf16.msra.mxu1 %v1527_v52 }
  0x6a   : > { %1071 = vmatpush.bf16.msra.mxu1 %v1526_v53 }
  0xa9   : > { %v859_v20 = vpop.f32.mrf.mxu0 }
  0xaa   : > { %v872_v21 = vpop.f32.mrf.mxu1 }
  0xab   : > { %v873_v31 = vadd.f32 %v872_v21, %v859_v20 }
  0xb1   : > { %v885_v22 = vpop.f32.mrf.mxu2  ;;  %v861_v24 = vpop.f32.mrf.mxu0 }
  0xb2   : > { %v898_v23 = vpop.f32.mrf.mxu3  ;;  %v874_v25 = vpop.f32.mrf.mxu1  ;;  %v886_v33 = vadd.f32 %v885_v22, %v873_v31 }
  0xb4   : > { %v899_v34 = vadd.f32 %v898_v23, %v886_v33 }
  0xb9   : > { %v887_v27 = vpop.f32.mrf.mxu2 }
  0xba   : > { %v900_v29 = vpop.f32.mrf.mxu3 }
  0xc9   : > { %v911_v35 = vpop.f32.mrf.mxu0 }
  0xca   : > { %v924_v36 = vpop.f32.mrf.mxu1  ;;  %v912_v37 = vadd.f32 %v911_v35, %v899_v34 }
  0xcc   : > { %v925_v38 = vadd.f32 %v924_v36, %v912_v37 }
  0xd1   : > { %v937_v39 = vpop.f32.mrf.mxu2  ;;  %v913_v43 = vpop.f32.mrf.mxu0 }
  0xd2   : > { %v950_v40 = vpop.f32.mrf.mxu3  ;;  %v938_v41 = vadd.f32 %v937_v39, %v925_v38  ;;  %v926_v44 = vpop.f32.mrf.mxu1 }
  0xd4   : > { %v951_v45 = vadd.f32 %v950_v40, %v938_v41 }
  0xd6   : > { %v964_v46 = vadd.f32 %v1558_v42, %v951_v45 }
  0xd8   : > { %985 = vmatpush.msra.mxu0 %v964_v46 }
  0xd9   : > { %v939_v48 = vpop.f32.mrf.mxu2  ;;  %1426 = vmatmul.msk.f32.vlgmr.msra.gmra.mxu0 %vm966_vm0, %v965_v47 }
  0xda   : > { %v952_v49 = vpop.f32.mrf.mxu3 }
 0x156   : > { %v987_v54 = vpop.f32.mrf.mxu0 }
 0x157   : > { %v990_v55 = vmul.f32 0.5, %v987_v54 }
 0x159   : > { %1560 = vtanh.f32 %v990_v55 }
 0x15f   : > { %v1561_v56 = vpop.eup %1560 }
 0x160   : > { %v992_v57 = vadd.f32 1.0, %v1561_v56 }
 0x162   : > { %v993_v58 = vmul.f32 0.5, %v992_v57 }
 0x164   : > { %v994_v59 = vmul.f32 %v993_v58, %v987_v54 }
 0x166   : > { %v995_v60 = vpack.c.bf16 %v994_v59, %v994_v59 }
 0x168   : > { %1072 = vmatmul.bf16.vlgmr.msra.gmra.mxu1 %v995_v60 }
 0x1e5   : > { %v1073_v62 = vpop.f32.mrf.mxu1 }
 0x1e6   : > { %v1074_v63 = vadd.f32 %v1559_v61, %v1073_v62 }
 0x1e8   : > { %1077 = vst [vmem:[%s299_s25] sm:$0xff] %v1074_v63 }
 0x1ed   : > { %v1075_v0 = vpop.f32.mrf.mxu1 }
 0x1ee PF: > { %s16_s23 = sadd.s32 1, %s1584_s23   ;;  %s1900_s21 = smov %s1580_s22 }
 0x1ef   : > { %p13_p5 = scmp.ge.s32.totalorder %s16_s23, 4   ;;  %s1901_s22 = smov %s1903_s24 }
 0x1f1   :  { %15 = sbr.rel (!%p13_p5) target bundleno = 2 (0x2), region = 85 }

</bundles_post_ra>
